<compile_context>
chip_gen: v5e
topology: v5e:2x2
jax: 0.10.0
libtpu: 0.0.40
codegen_flags: <defaults>
</compile_context>

<pallas_src>
import jax
import jax.numpy as jnp
from jax.experimental import pallas as pl
from jax.experimental.pallas import tpu as pltpu


def _round_up(n, m):
    return (n + m - 1) // m * m


def _make_kernel(c_in, c_mid, c_out, wp, n_lane, p0, y1p_len):
    # tap t = dy*3 + dx  ->  lane offset dy*wp + dx in the flattened padded plane
    tap_offsets = tuple(dy * wp + dx for dy in range(3) for dx in range(3))
    store_start = p0 + wp + 1          # multiple of 128 by construction of p0
    store_end = store_start + n_lane   # multiple of 128 (n_lane is lane-dense)
    head = store_start
    tail = y1p_len - store_end

    def kernel(x_ref, mask_ref, w1_ref, b1_ref, s1_ref, t1_ref,
               w2_ref, s2_ref, t2_ref, o_ref, y1p_ref):
        # ---- conv1 as ONE stacked matmul: (c_mid, 9*c_in) @ (9*c_in, n_lane) ----
        x_im2col = jnp.concatenate(
            [x_ref[:, off:off + n_lane] for off in tap_offsets], axis=0)
        acc1 = jnp.dot(w1_ref[...], x_im2col, preferred_element_type=jnp.float32)

        identity = acc1 + b1_ref[...]          # pre-BN conv1 output (with bias)

        # BN1 (conv bias folded into the shift) + ReLU; zero the row-wrap / tail
        # garbage lanes so they become the zero padding of the y1 plane.
        y1 = jnp.maximum(acc1 * s1_ref[...] + t1_ref[...], 0.0) * mask_ref[...]

        # Re-embed y1 into the zero-padded plane scratch. All three stores are
        # 128-lane aligned, full-width, unmasked. Head/tail are the only lanes
        # the interior store never touches, so zeroing just those (1 tile each)
        # keeps the plane's zero padding valid without a full-buffer clear.
        y1p_ref[:, :head] = jnp.zeros((c_mid, head), jnp.float32)
        y1p_ref[:, store_end:] = jnp.zeros((c_mid, tail), jnp.float32)
        y1p_ref[:, store_start:store_end] = y1

        # ---- conv2: same single stacked matmul on the padded y1 plane ----
        y_im2col = jnp.concatenate(
            [y1p_ref[:, p0 + off:p0 + off + n_lane] for off in tap_offsets], axis=0)
        acc2 = jnp.dot(w2_ref[...], y_im2col, preferred_element_type=jnp.float32)

        # BN2 (conv2 bias folded into the shift) + residual add + ReLU
        o_ref[...] = jnp.maximum(acc2 * s2_ref[...] + t2_ref[...] + identity,
                                 0.0).astype(o_ref.dtype)

    return kernel


def conv_block_nested(x, w1, b1, bn1, w2, b2, bn2, eps=1e-5):
    """x: (B, in_ch, H, W). w1: (mid_ch, in_ch, 3, 3), w2: (out_ch, mid_ch, 3, 3).
    bn1/bn2: (gamma, beta, running_mean, running_var). Returns (B, out_ch, H, W)."""
    B, c_in, H, W = x.shape
    c_mid = w1.shape[0]
    c_out = w2.shape[0]
    assert w1.shape == (c_mid, c_in, 3, 3)
    assert w2.shape == (c_out, c_mid, 3, 3)
    assert c_out == c_mid, "residual add requires out_ch == mid_ch"

    f32 = jnp.float32

    # channel counts padded to sublane multiples (no-op for real SNUNet widths)
    c_in_p = _round_up(c_in, 8)
    c_mid_p = _round_up(c_mid, 8)
    c_out_p = _round_up(c_out, 8)

    hp, wp = H + 2, W + 2
    n_work = H * wp                         # work-domain length (padded-width rows)
    n_lane = _round_up(n_work, 128)         # lane-dense work domain
    # input plane buffer must cover plane data and (max tap offset + n_lane)
    L = _round_up(max(hp * wp, 2 * wp + 2 + n_lane), 128)
    # y1 plane scratch: interior write starts at a 128-aligned lane
    p0 = (-(wp + 1)) % 128
    y1p_len = _round_up(p0 + 2 * wp + 2 + n_lane, 128)

    # TODO(synk): the input pad/flatten and the output crop below are extra XLA HBM
    #             passes; at large planes move the halo embedding into the kernel.
    xp = jnp.pad(x, ((0, 0), (0, c_in_p - c_in), (1, 1), (1, 1))).astype(f32)
    x_flat = jnp.pad(xp.reshape(B, c_in_p, hp * wp),
                     ((0, 0), (0, 0), (0, L - hp * wp)))

    # stacked 3x3 taps: w_st[co, t*ci_p + ci] = w[co, ci, dy, dx],  t = dy*3 + dx
    def stack_taps(w, co_p, ci_p):
        co, ci = w.shape[0], w.shape[1]
        wpad = jnp.pad(w, ((0, co_p - co), (0, ci_p - ci), (0, 0), (0, 0)))
        return jnp.transpose(wpad, (0, 2, 3, 1)).reshape(co_p, 9 * ci_p).astype(f32)

    w1_st = stack_taps(w1, c_mid_p, c_in_p)
    w2_st = stack_taps(w2, c_out_p, c_mid_p)

    # eval-mode BatchNorm folded to per-channel scale/shift; conv bias folded in
    def fold_bn(p, bias, c, c_p):
        g, beta, mean, var = [jnp.asarray(v, f32) for v in p]
        s = g / jnp.sqrt(var + eps)
        t = beta - mean * s + jnp.asarray(bias, f32) * s
        s = jnp.pad(s, (0, c_p - c)).reshape(c_p, 1)
        t = jnp.pad(t, (0, c_p - c)).reshape(c_p, 1)
        return s, t

    s1, t1 = fold_bn(bn1, b1, c_mid, c_mid_p)
    s2, t2 = fold_bn(bn2, b2, c_out, c_out_p)
    b1c = jnp.pad(jnp.asarray(b1, f32), (0, c_mid_p - c_mid)).reshape(c_mid_p, 1)

    # lanes whose column index (mod wp) >= W, or past n_work, are garbage lanes
    col = jnp.arange(n_lane, dtype=jnp.int32)
    mask = ((col % wp < W) & (col < n_work)).astype(f32).reshape(1, n_lane)

    kernel = _make_kernel(c_in_p, c_mid_p, c_out_p, wp, n_lane, p0, y1p_len)

    # advisory cost estimate for the XLA scheduler
    flops = 2 * 9 * (c_in * c_mid + c_mid * c_out) * H * W * B
    bytes_accessed = 4 * (x_flat.size + B * c_out_p * n_lane
                          + w1_st.size + w2_st.size)

    # VMEM budget sized to the chosen blocks (double-buffered in/out + scratch
    # + im2col temporaries), with generous headroom.
    # TODO(synk): single-buffer the constant-index weight blocks
    #             (pipeline_mode=pl.Buffered(1)) once weights reach MBs.
    vmem_est = 4 * (2 * c_in_p * L + 2 * c_out_p * n_lane + c_mid_p * y1p_len
                    + 9 * (c_in_p + c_mid_p) * n_lane
                    + w1_st.size + w2_st.size + 4 * c_mid_p + n_lane)
    vmem_limit = int(min(100 * 2**20, 2 * vmem_est + (8 << 20)))

    out_work = pl.pallas_call(
        kernel,
        out_shape=jax.ShapeDtypeStruct((B, c_out_p, n_lane), x.dtype),
        grid_spec=pltpu.PrefetchScalarGridSpec(
            num_scalar_prefetch=0,
            grid=(B,),
            in_specs=[
                pl.BlockSpec((None, c_in_p, L), lambda b: (b, 0, 0)),    # x plane
                pl.BlockSpec((1, n_lane), lambda b: (0, 0)),             # validity mask
                pl.BlockSpec((c_mid_p, 9 * c_in_p), lambda b: (0, 0)),   # conv1 taps (stacked)
                pl.BlockSpec((c_mid_p, 1), lambda b: (0, 0)),            # conv1 bias (identity)
                pl.BlockSpec((c_mid_p, 1), lambda b: (0, 0)),            # bn1 scale
                pl.BlockSpec((c_mid_p, 1), lambda b: (0, 0)),            # bn1 shift (+b1*s1)
                pl.BlockSpec((c_out_p, 9 * c_mid_p), lambda b: (0, 0)),  # conv2 taps (stacked)
                pl.BlockSpec((c_out_p, 1), lambda b: (0, 0)),            # bn2 scale
                pl.BlockSpec((c_out_p, 1), lambda b: (0, 0)),            # bn2 shift (+b2*s2)
            ],
            out_specs=pl.BlockSpec((None, c_out_p, n_lane), lambda b: (b, 0, 0)),
            scratch_shapes=[pltpu.VMEM((c_mid_p, y1p_len), jnp.float32)],  # padded y1 plane
        ),
        compiler_params=pltpu.CompilerParams(
            dimension_semantics=("parallel",),      # batch shards across TCs on v7x
            vmem_limit_bytes=vmem_limit),
        cost_estimate=pl.CostEstimate(flops=flops, transcendentals=0,
                                      bytes_accessed=int(bytes_accessed)),
    )(x_flat, mask, w1_st, b1c, s1, t1, w2_st, s2, t2)

    # crop the lane-dense work domain back to (B, C, H, W)
    out = out_work[:, :c_out, :n_work].reshape(B, c_out, H, wp)[:, :, :, :W]
    return out


def reference(x, w1, b1, bn1, w2, b2, bn2, eps=1e-5):
    dn = ('NCHW', 'OIHW', 'NCHW')

    def conv(inp, w, b):
        y = jax.lax.conv_general_dilated(inp, w, (1, 1), 'SAME',
                                         dimension_numbers=dn,
                                         precision=jax.lax.Precision.HIGHEST)
        return y + b[None, :, None, None]

    def bn(inp, p):
        g, beta, mean, var = p
        return ((inp - mean[None, :, None, None])
                / jnp.sqrt(var[None, :, None, None] + eps)
                * g[None, :, None, None] + beta[None, :, None, None])

    y = conv(x, w1, b1)
    identity = y
    y = jnp.maximum(bn(y, bn1), 0.0)
    y = conv(y, w2, b2)
    y = bn(y, bn2)
    return jnp.maximum(y + identity, 0.0)


if __name__ == "__main__":
    key = jax.random.PRNGKey(0)
    B, in_ch, mid_ch, out_ch, H, W = 2, 4, 8, 8, 16, 16
    ks = jax.random.split(key, 13)

    x = jax.random.normal(ks[0], (B, in_ch, H, W), dtype=jnp.float32)
    w1 = jax.random.normal(ks[1], (mid_ch, in_ch, 3, 3), jnp.float32) / jnp.sqrt(9.0 * in_ch)
    b1 = jax.random.normal(ks[2], (mid_ch,), jnp.float32) * 0.1
    w2 = jax.random.normal(ks[3], (out_ch, mid_ch, 3, 3), jnp.float32) / jnp.sqrt(9.0 * mid_ch)
    b2 = jax.random.normal(ks[4], (out_ch,), jnp.float32) * 0.1

    bn1 = (1.0 + 0.1 * jax.random.normal(ks[5], (mid_ch,), jnp.float32),   # gamma
           0.1 * jax.random.normal(ks[6], (mid_ch,), jnp.float32),         # beta
           0.1 * jax.random.normal(ks[7], (mid_ch,), jnp.float32),         # running_mean
           jax.nn.softplus(jax.random.normal(ks[8], (mid_ch,), jnp.float32)) + 0.5)  # running_var
    bn2 = (1.0 + 0.1 * jax.random.normal(ks[9], (out_ch,), jnp.float32),
           0.1 * jax.random.normal(ks[10], (out_ch,), jnp.float32),
           0.1 * jax.random.normal(ks[11], (out_ch,), jnp.float32),
           jax.nn.softplus(jax.random.normal(ks[12], (out_ch,), jnp.float32)) + 0.5)

    out = conv_block_nested(x, w1, b1, bn1, w2, b2, bn2)
    out = jax.block_until_ready(out)

    ref = reference(x, w1, b1, bn1, w2, b2, bn2)
    assert out.shape == (B, out_ch, H, W), out.shape
    max_err = float(jnp.max(jnp.abs(out - ref)))
    assert jnp.allclose(out, ref, atol=1e-4, rtol=1e-4), f"mismatch vs reference: {max_err}"

    print("KERNEL_OK")
</pallas_src>

<mosaic_0001>
module attributes {stable_mosaic.version = 11 : i64} {
  func.func @kernel(%arg0: i32, %arg1: memref<1x8x512xf32, #tpu.memory_space<vmem>>, %arg2: memref<1x384xf32, #tpu.memory_space<vmem>>, %arg3: memref<8x72xf32, #tpu.memory_space<vmem>>, %arg4: memref<8x1xf32, #tpu.memory_space<vmem>>, %arg5: memref<8x1xf32, #tpu.memory_space<vmem>>, %arg6: memref<8x1xf32, #tpu.memory_space<vmem>>, %arg7: memref<8x72xf32, #tpu.memory_space<vmem>>, %arg8: memref<8x1xf32, #tpu.memory_space<vmem>>, %arg9: memref<8x1xf32, #tpu.memory_space<vmem>>, %arg10: memref<1x8x384xf32, #tpu.memory_space<vmem>>, %arg11: memref<8x640xf32, #tpu.memory_space<vmem>>) attributes {dimension_semantics = [#tpu.dimension_semantics<parallel>], iteration_bounds = array<i64: 2>, scalar_prefetch = 0 : i64, scratch_operands = 1 : i64, tpu.core_type = #tpu.core_type<tc>, window_params = [{transform_indices = @transform_0, window_bounds = array<i64: 1, 8, 512>}, {pipeline_mode = #tpu.pipeline_mode<synchronous>, transform_indices = @transform_1, window_bounds = array<i64: 1, 384>}, {pipeline_mode = #tpu.pipeline_mode<synchronous>, transform_indices = @transform_2, window_bounds = array<i64: 8, 72>}, {pipeline_mode = #tpu.pipeline_mode<synchronous>, transform_indices = @transform_3, window_bounds = array<i64: 8, 1>}, {pipeline_mode = #tpu.pipeline_mode<synchronous>, transform_indices = @transform_4, window_bounds = array<i64: 8, 1>}, {pipeline_mode = #tpu.pipeline_mode<synchronous>, transform_indices = @transform_5, window_bounds = array<i64: 8, 1>}, {pipeline_mode = #tpu.pipeline_mode<synchronous>, transform_indices = @transform_6, window_bounds = array<i64: 8, 72>}, {pipeline_mode = #tpu.pipeline_mode<synchronous>, transform_indices = @transform_7, window_bounds = array<i64: 8, 1>}, {pipeline_mode = #tpu.pipeline_mode<synchronous>, transform_indices = @transform_8, window_bounds = array<i64: 8, 1>}, {transform_indices = @transform_9, window_bounds = array<i64: 1, 8, 384>}]} {
    %c0 = arith.constant 0 : index
    %c0_0 = arith.constant 0 : index
    %c0_1 = arith.constant 0 : index
    %0 = vector.load %arg1[%c0, %c0_0, %c0_1] : memref<1x8x512xf32, #tpu.memory_space<vmem>>, vector<1x8x384xf32>
    %1 = vector.shape_cast %0 : vector<1x8x384xf32> to vector<8x384xf32>
    %c0_2 = arith.constant 0 : index
    %c0_3 = arith.constant 0 : index
    %c1 = arith.constant 1 : index
    %2 = vector.load %arg1[%c0_2, %c0_3, %c1] : memref<1x8x512xf32, #tpu.memory_space<vmem>>, vector<1x8x384xf32>
    %3 = vector.shape_cast %2 : vector<1x8x384xf32> to vector<8x384xf32>
    %c0_4 = arith.constant 0 : index
    %c0_5 = arith.constant 0 : index
    %c2 = arith.constant 2 : index
    %4 = vector.load %arg1[%c0_4, %c0_5, %c2] : memref<1x8x512xf32, #tpu.memory_space<vmem>>, vector<1x8x384xf32>
    %5 = vector.shape_cast %4 : vector<1x8x384xf32> to vector<8x384xf32>
    %c0_6 = arith.constant 0 : index
    %c0_7 = arith.constant 0 : index
    %c18 = arith.constant 18 : index
    %6 = vector.load %arg1[%c0_6, %c0_7, %c18] : memref<1x8x512xf32, #tpu.memory_space<vmem>>, vector<1x8x384xf32>
    %7 = vector.shape_cast %6 : vector<1x8x384xf32> to vector<8x384xf32>
    %c0_8 = arith.constant 0 : index
    %c0_9 = arith.constant 0 : index
    %c19 = arith.constant 19 : index
    %8 = vector.load %arg1[%c0_8, %c0_9, %c19] : memref<1x8x512xf32, #tpu.memory_space<vmem>>, vector<1x8x384xf32>
    %9 = vector.shape_cast %8 : vector<1x8x384xf32> to vector<8x384xf32>
    %c0_10 = arith.constant 0 : index
    %c0_11 = arith.constant 0 : index
    %c20 = arith.constant 20 : index
    %10 = vector.load %arg1[%c0_10, %c0_11, %c20] : memref<1x8x512xf32, #tpu.memory_space<vmem>>, vector<1x8x384xf32>
    %11 = vector.shape_cast %10 : vector<1x8x384xf32> to vector<8x384xf32>
    %c0_12 = arith.constant 0 : index
    %c0_13 = arith.constant 0 : index
    %c36 = arith.constant 36 : index
    %12 = vector.load %arg1[%c0_12, %c0_13, %c36] : memref<1x8x512xf32, #tpu.memory_space<vmem>>, vector<1x8x384xf32>
    %13 = vector.shape_cast %12 : vector<1x8x384xf32> to vector<8x384xf32>
    %c0_14 = arith.constant 0 : index
    %c0_15 = arith.constant 0 : index
    %c37 = arith.constant 37 : index
    %14 = vector.load %arg1[%c0_14, %c0_15, %c37] : memref<1x8x512xf32, #tpu.memory_space<vmem>>, vector<1x8x384xf32>
    %15 = vector.shape_cast %14 : vector<1x8x384xf32> to vector<8x384xf32>
    %c0_16 = arith.constant 0 : index
    %c0_17 = arith.constant 0 : index
    %c38 = arith.constant 38 : index
    %16 = vector.load %arg1[%c0_16, %c0_17, %c38] : memref<1x8x512xf32, #tpu.memory_space<vmem>>, vector<1x8x384xf32>
    %17 = vector.shape_cast %16 : vector<1x8x384xf32> to vector<8x384xf32>
    %18 = tpu.concatenate %1, %3, %5, %7, %9, %11, %13, %15, %17 in 0 : vector<8x384xf32>, vector<8x384xf32>, vector<8x384xf32>, vector<8x384xf32>, vector<8x384xf32>, vector<8x384xf32>, vector<8x384xf32>, vector<8x384xf32>, vector<8x384xf32> -> vector<72x384xf32>
    %c0_18 = arith.constant 0 : index
    %c0_19 = arith.constant 0 : index
    %19 = vector.load %arg3[%c0_18, %c0_19] : memref<8x72xf32, #tpu.memory_space<vmem>>, vector<8x72xf32>
    %cst = arith.constant dense<0.000000e+00> : vector<8x384xf32>
    %20 = tpu.matmul %19, %18, %cst {dimension_numbers = #tpu.dot_dimension_numbers<[1], [0], [0], [1], [0, 0, 1, 1], [], []>} : vector<8x72xf32>, vector<72x384xf32>, vector<8x384xf32> -> vector<8x384xf32>
    %c0_20 = arith.constant 0 : index
    %c0_21 = arith.constant 0 : index
    %21 = vector.load %arg4[%c0_20, %c0_21] : memref<8x1xf32, #tpu.memory_space<vmem>>, vector<8x1xf32>
    %22 = vector.broadcast %21 : vector<8x1xf32> to vector<8x384xf32>
    %23 = arith.addf %20, %22 : vector<8x384xf32>
    %c0_22 = arith.constant 0 : index
    %c0_23 = arith.constant 0 : index
    %24 = vector.load %arg5[%c0_22, %c0_23] : memref<8x1xf32, #tpu.memory_space<vmem>>, vector<8x1xf32>
    %25 = vector.broadcast %24 : vector<8x1xf32> to vector<8x384xf32>
    %26 = arith.mulf %20, %25 : vector<8x384xf32>
    %c0_24 = arith.constant 0 : index
    %c0_25 = arith.constant 0 : index
    %27 = vector.load %arg6[%c0_24, %c0_25] : memref<8x1xf32, #tpu.memory_space<vmem>>, vector<8x1xf32>
    %28 = vector.broadcast %27 : vector<8x1xf32> to vector<8x384xf32>
    %29 = arith.addf %26, %28 : vector<8x384xf32>
    %cst_26 = arith.constant 0.000000e+00 : f32
    %30 = vector.broadcast %cst_26 : f32 to vector<8x384xf32>
    %31 = arith.maximumf %29, %30 : vector<8x384xf32>
    %c0_27 = arith.constant 0 : index
    %c0_28 = arith.constant 0 : index
    %32 = vector.load %arg2[%c0_27, %c0_28] : memref<1x384xf32, #tpu.memory_space<vmem>>, vector<1x384xf32>
    %33 = vector.broadcast %32 : vector<1x384xf32> to vector<8x384xf32>
    %34 = arith.mulf %31, %33 : vector<8x384xf32>
    %cst_29 = arith.constant 0.000000e+00 : f32
    %35 = vector.broadcast %cst_29 : f32 to vector<8x128xf32>
    %c0_30 = arith.constant 0 : index
    %c0_31 = arith.constant 0 : index
    %36 = vector.load %arg11[%c0_30, %c0_31] : memref<8x640xf32, #tpu.memory_space<vmem>>, vector<8x128xf32>
    tpu.vector_store %arg11[%c0_30, %c0_31], %35 {strides = array<i32>} : memref<8x640xf32, #tpu.memory_space<vmem>>, vector<8x128xf32>,
    %cst_32 = arith.constant 0.000000e+00 : f32
    %37 = vector.broadcast %cst_32 : f32 to vector<8x128xf32>
    %c0_33 = arith.constant 0 : index
    %c512 = arith.constant 512 : index
    %38 = vector.load %arg11[%c0_33, %c512] : memref<8x640xf32, #tpu.memory_space<vmem>>, vector<8x128xf32>
    tpu.vector_store %arg11[%c0_33, %c512], %37 {strides = array<i32>} : memref<8x640xf32, #tpu.memory_space<vmem>>, vector<8x128xf32>,
    %c0_34 = arith.constant 0 : index
    %c128 = arith.constant 128 : index
    %39 = vector.load %arg11[%c0_34, %c128] : memref<8x640xf32, #tpu.memory_space<vmem>>, vector<8x384xf32>
    tpu.vector_store %arg11[%c0_34, %c128], %34 {strides = array<i32>} : memref<8x640xf32, #tpu.memory_space<vmem>>, vector<8x384xf32>,
    %c0_35 = arith.constant 0 : index
    %c109 = arith.constant 109 : index
    %40 = vector.load %arg11[%c0_35, %c109] : memref<8x640xf32, #tpu.memory_space<vmem>>, vector<8x384xf32>
    %c0_36 = arith.constant 0 : index
    %c110 = arith.constant 110 : index
    %41 = vector.load %arg11[%c0_36, %c110] : memref<8x640xf32, #tpu.memory_space<vmem>>, vector<8x384xf32>
    %c0_37 = arith.constant 0 : index
    %c111 = arith.constant 111 : index
    %42 = vector.load %arg11[%c0_37, %c111] : memref<8x640xf32, #tpu.memory_space<vmem>>, vector<8x384xf32>
    %c0_38 = arith.constant 0 : index
    %c127 = arith.constant 127 : index
    %43 = vector.load %arg11[%c0_38, %c127] : memref<8x640xf32, #tpu.memory_space<vmem>>, vector<8x384xf32>
    %c0_39 = arith.constant 0 : index
    %c128_40 = arith.constant 128 : index
    %44 = vector.load %arg11[%c0_39, %c128_40] : memref<8x640xf32, #tpu.memory_space<vmem>>, vector<8x384xf32>
    %c0_41 = arith.constant 0 : index
    %c129 = arith.constant 129 : index
    %45 = vector.load %arg11[%c0_41, %c129] : memref<8x640xf32, #tpu.memory_space<vmem>>, vector<8x384xf32>
    %c0_42 = arith.constant 0 : index
    %c145 = arith.constant 145 : index
    %46 = vector.load %arg11[%c0_42, %c145] : memref<8x640xf32, #tpu.memory_space<vmem>>, vector<8x384xf32>
    %c0_43 = arith.constant 0 : index
    %c146 = arith.constant 146 : index
    %47 = vector.load %arg11[%c0_43, %c146] : memref<8x640xf32, #tpu.memory_space<vmem>>, vector<8x384xf32>
    %c0_44 = arith.constant 0 : index
    %c147 = arith.constant 147 : index
    %48 = vector.load %arg11[%c0_44, %c147] : memref<8x640xf32, #tpu.memory_space<vmem>>, vector<8x384xf32>
    %49 = tpu.concatenate %40, %41, %42, %43, %44, %45, %46, %47, %48 in 0 : vector<8x384xf32>, vector<8x384xf32>, vector<8x384xf32>, vector<8x384xf32>, vector<8x384xf32>, vector<8x384xf32>, vector<8x384xf32>, vector<8x384xf32>, vector<8x384xf32> -> vector<72x384xf32>
    %c0_45 = arith.constant 0 : index
    %c0_46 = arith.constant 0 : index
    %50 = vector.load %arg7[%c0_45, %c0_46] : memref<8x72xf32, #tpu.memory_space<vmem>>, vector<8x72xf32>
    %cst_47 = arith.constant dense<0.000000e+00> : vector<8x384xf32>
    %51 = tpu.matmul %50, %49, %cst_47 {dimension_numbers = #tpu.dot_dimension_numbers<[1], [0], [0], [1], [0, 0, 1, 1], [], []>} : vector<8x72xf32>, vector<72x384xf32>, vector<8x384xf32> -> vector<8x384xf32>
    %c0_48 = arith.constant 0 : index
    %c0_49 = arith.constant 0 : index
    %52 = vector.load %arg8[%c0_48, %c0_49] : memref<8x1xf32, #tpu.memory_space<vmem>>, vector<8x1xf32>
    %53 = vector.broadcast %52 : vector<8x1xf32> to vector<8x384xf32>
    %54 = arith.mulf %51, %53 : vector<8x384xf32>
    %c0_50 = arith.constant 0 : index
    %c0_51 = arith.constant 0 : index
    %55 = vector.load %arg9[%c0_50, %c0_51] : memref<8x1xf32, #tpu.memory_space<vmem>>, vector<8x1xf32>
    %56 = vector.broadcast %55 : vector<8x1xf32> to vector<8x384xf32>
    %57 = arith.addf %54, %56 : vector<8x384xf32>
    %58 = arith.addf %57, %23 : vector<8x384xf32>
    %cst_52 = arith.constant 0.000000e+00 : f32
    %59 = vector.broadcast %cst_52 : f32 to vector<8x384xf32>
    %60 = arith.maximumf %58, %59 : vector<8x384xf32>
    %c0_53 = arith.constant 0 : index
    %c0_54 = arith.constant 0 : index
    %c0_55 = arith.constant 0 : index
    %61 = vector.load %arg10[%c0_53, %c0_54, %c0_55] : memref<1x8x384xf32, #tpu.memory_space<vmem>>, vector<1x8x384xf32>
    %62 = vector.shape_cast %61 : vector<1x8x384xf32> to vector<8x384xf32>
    %63 = vector.shape_cast %60 : vector<8x384xf32> to vector<1x8x384xf32>
    tpu.vector_store %arg10[%c0_53, %c0_54, %c0_55], %63 {strides = array<i32>} : memref<1x8x384xf32, #tpu.memory_space<vmem>>, vector<1x8x384xf32>,
    return
  }
  func.func @transform_0(%arg0: i32) -> (i32, i32, i32) {
    %c0_i32 = arith.constant 0 : i32
    %c0_i32_0 = arith.constant 0 : i32
    %c0_i32_1 = arith.constant 0 : i32
    return %arg0, %c0_i32, %c0_i32_0 : i32, i32, i32
  }
  func.func @transform_1(%arg0: i32) -> (i32, i32) {
    %c0_i32 = arith.constant 0 : i32
    %c0_i32_0 = arith.constant 0 : i32
    %c0_i32_1 = arith.constant 0 : i32
    return %c0_i32, %c0_i32_0 : i32, i32
  }
  func.func @transform_2(%arg0: i32) -> (i32, i32) {
    %c0_i32 = arith.constant 0 : i32
    %c0_i32_0 = arith.constant 0 : i32
    %c0_i32_1 = arith.constant 0 : i32
    return %c0_i32, %c0_i32_0 : i32, i32
  }
  func.func @transform_3(%arg0: i32) -> (i32, i32) {
    %c0_i32 = arith.constant 0 : i32
    %c0_i32_0 = arith.constant 0 : i32
    %c0_i32_1 = arith.constant 0 : i32
    return %c0_i32, %c0_i32_0 : i32, i32
  }
  func.func @transform_4(%arg0: i32) -> (i32, i32) {
    %c0_i32 = arith.constant 0 : i32
    %c0_i32_0 = arith.constant 0 : i32
    %c0_i32_1 = arith.constant 0 : i32
    return %c0_i32, %c0_i32_0 : i32, i32
  }
  func.func @transform_5(%arg0: i32) -> (i32, i32) {
    %c0_i32 = arith.constant 0 : i32
    %c0_i32_0 = arith.constant 0 : i32
    %c0_i32_1 = arith.constant 0 : i32
    return %c0_i32, %c0_i32_0 : i32, i32
  }
  func.func @transform_6(%arg0: i32) -> (i32, i32) {
    %c0_i32 = arith.constant 0 : i32
    %c0_i32_0 = arith.constant 0 : i32
    %c0_i32_1 = arith.constant 0 : i32
    return %c0_i32, %c0_i32_0 : i32, i32
  }
  func.func @transform_7(%arg0: i32) -> (i32, i32) {
    %c0_i32 = arith.constant 0 : i32
    %c0_i32_0 = arith.constant 0 : i32
    %c0_i32_1 = arith.constant 0 : i32
    return %c0_i32, %c0_i32_0 : i32, i32
  }
  func.func @transform_8(%arg0: i32) -> (i32, i32) {
    %c0_i32 = arith.constant 0 : i32
    %c0_i32_0 = arith.constant 0 : i32
    %c0_i32_1 = arith.constant 0 : i32
    return %c0_i32, %c0_i32_0 : i32, i32
  }
  func.func @transform_9(%arg0: i32) -> (i32, i32, i32) {
    %c0_i32 = arith.constant 0 : i32
    %c0_i32_0 = arith.constant 0 : i32
    %c0_i32_1 = arith.constant 0 : i32
    return %arg0, %c0_i32, %c0_i32_0 : i32, i32, i32
  }
}

</mosaic_0001>

<bundles_post_ra>
// kernel: tpu_custom_call.1
= control target key start
LH: loop header
LB: loop body
LE: loop exit
PB: predicated region body
PF: predicated region fallthrough
CT: control target
= control target key end

     0   :  { %14 = vsyncpa [#allocation4], 0  ;;  %s1835_s0 = inlined_call_operand.hbm [shape: f32[2,8,512], index: 0, kind: input, shape index: {}]   ;;  %s1836_s1 = inlined_call_operand.vmem [shape: f32[1,384], index: 1, kind: input, shape index: {}]   ;;  %s1837_s2 = inlined_call_operand.vmem [shape: f32[8,72], index: 2, kind: input, shape index: {}]   ;;  %s1838_s3 = inlined_call_operand.vmem [shape: f32[8,1], index: 3, kind: input, shape index: {}]   ;;  %s1839_s4 = inlined_call_operand.vmem [shape: f32[8,1], index: 4, kind: input, shape index: {}]   ;;  %s1840_s5 = inlined_call_operand.vmem [shape: f32[8,1], index: 5, kind: input, shape index: {}]   ;;  %s1841_s6 = inlined_call_operand.vmem [shape: f32[8,72], index: 6, kind: input, shape index: {}]   ;;  %s1842_s7 = inlined_call_operand.vmem [shape: f32[8,1], index: 7, kind: input, shape index: {}]   ;;  %s1843_s8 = inlined_call_operand.vmem [shape: f32[8,1], index: 8, kind: input, shape index: {}]   ;;  %s1844_s9 = inlined_call_operand.hbm [shape: f32[2,8,384], index: 9, kind: output, shape index: {}]  }
   0x1   :  { %16 = vsyncpa [#allocation4 + $0x1], 0 }
   0x2   :  { %17 = vsyncpa [#allocation5], 0 }
   0x3   :  { %19 = vsyncpa [#allocation5 + $0x1], 0  ;;  %s1483_s30 = smov 0   ;;  %s1485_s10 = smov 0  }
   0x4   :  { %s1487_s11 = smov 0   ;;  %s1489_s12 = smov 0  }
   0x5 LB: > { %1848 = sst [smem:[#allocation9_spill]] %s1416_s11  ;;  %s1504_s13 = sadd.s32 4294967295, %s1420_s12   ;;  %s1420_s12 = sphi %s1489_s12, %s1857_s12   ;;  %s1416_s11 = sphi %s1487_s11, %s1859_s11   ;;  %s1412_s10 = sphi %s1485_s10, %s1861_s10   ;;  %s1408_s30 = sphi %s1483_s30, %s1860_s30  }
   0x6   : > { %s999_s14 = sadd.s32 4294967294, %s1420_s12   ;;  %s1508_s15 = sadd.s32 1, %s1420_s12  }
   0x7   : > { %1849 = sst [smem:[#allocation10_spill]] %s1508_s15  ;;  %s32_s16 = sadd.s32 1, %s1416_s11 }
   0x8   : > { %s29_s17 = ssub.s32 %s1420_s12, %s1508_s15  ;;  %p39_p0 = scmp.ne.s32.totalorder %s1416_s11, %s1412_s10 }
   0x9   : > { %p30_p1 = scmp.eq.s32.totalorder %s29_s17, 0  ;;  %p40_p2 = scmp.eq.s32.totalorder %s1420_s12, 0 }
   0xa   : > { %p45_p3 = scmp.ne.s32.totalorder %s1412_s10, %s1408_s30  ;;  %p46_p4 = scmp.eq.s32.totalorder %s1504_s13, 0 }
   0xb   : > { %s1520_s18 = scalar_select %p30_p1, %s1416_s11, %s32_s16  }
   0xc   : > { %p1522_p5 = por %p40_p2, %p39_p0  ;;  %p1526_p6 = por %p46_p4, %p45_p3 }
   0xd   : > { %1850 = sst [smem:[#allocation11_spill]] %s1520_s18  ;;  %p237_p7 = scmp.eq.s32.totalorder %s1504_s13, 1 }
   0xe   : > { %p243_p8 = scmp.eq.s32.totalorder %s999_s14, 1  ;;  %p1031_p10 = scmp.lt.s32.totalorder %s1420_s12, 2 }
   0xf   : > { %p1533_p11 = por %p237_p7, %p39_p0  ;;  %s287_s23 = sand.u32 1, %s1416_s11  }
  0x10   : > { %p1537_p12 = por %p243_p8, %p45_p3  ;;  %s1016_s24 = sshll.u32 %s1420_s12, 5 }
  0x11   : > { %s1002_s25 = sshll.u32 %s287_s23, 5  ;;  %s296_s28 = scalar_lea.hbm %s1835_s0, %s1016_s24 }
  0x12   : > { %s298_s29 = sshll.u32 %s296_s28, 4  ;;  %s291_s14 = scalar_lea.vmem [#allocation3], %s1002_s25  ;;  %s299_s29 = int_to_ptr.hbm [resolvable:$true] %s298_s29 }
  0x13   : > { %s300_s16 = sshll.u32 %s291_s14, 4  ;;  %p1548_p13 = pnand %p1031_p10, %p1522_p5  ;;  %s301_s16 = int_to_ptr.vmem [resolvable:$true] %s300_s16 }
  0x14   : > { %p1005_p0 = scmp.ge.s32.totalorder %s1420_s12, 1  ;;  %p305_p1 = scmp.lt.s32.totalorder %s1420_s12, 3 }
  0x15   : > { %s288_s18 = scalar_lea.sflag [#allocation4], %s287_s23  ;;  %s1324_s11 = sshra.s32 %s299_s29, 4  ;;  %s1325_s11 = int_to_ptr.hbm [resolvable:$true] %s1324_s11 }
  0x16   : > { %s1326_s15 = scalar_lea.hbm %s1325_s11, 32  ;;  %p1328_p3 = pneg %p1548_p13 }
  0x17   : > { %p1327_p2 = scmp.ne.s32.totalorder %s1325_s11, %s1326_s15  ;;  %s1331_s19 = scalar_lea.hbm %s1835_s0, 64 }
  0x18   : > { %p1332_p5 = scmp.lt.s32.totalorder %s1325_s11, %s1835_s0  ;;  %p1333_p8 = scmp.lt.s32.totalorder %s1331_s19, %s1326_s15 }
  0x19   : > { %p1329_p4 = pnand %p1328_p3, %p1327_p2 }
  0x1a   : > { %p1334_p10 = por %p1333_p8, %p1332_p5 }
  0x1b   : > { %p1330_p7 = pneg %p1329_p4 }
  0x1d   : > { %p1335_p9 = pnand %p1334_p10, %p1330_p7 }
  0x1f   : > { %1338 = shalt.err (!%p1335_p9)
}
  0x20   : > { %1026 = dma.hbm_to_vmem [thread:$0]  (!%p1548_p13), %s299_s29, 512, %s301_s16, %s288_s18  }
  0x21   : > { %p306_p2 = pnand %p1005_p0, %p305_p1 }
  0x22   : > { %s1569_s23 = sand.u32 (!%p306_p2), 1, %s1412_s10  }
  0x23   : > { %309 = sbr.rel (%p306_p2) target bundleno = 774 (0x306), region = 56  ;;  %s1006_s11 = sshll.u32 (!%p306_p2), %s1569_s23, 5 }
  0x24   : > { %s312_s15 = scalar_lea.sflag (!%p306_p2), [#allocation4], %s1569_s23  ;;  %s315_s28 = scalar_lea.vmem (!%p306_p2), [#allocation3], %s1006_s11 }
  0x28   : > { %1399 = dma.done.wait (%p1526_p6), %s312_s15, 512  }
  0x29   : > { %1401 = vsyncadd (%p1526_p6), %s312_s15, 4294966784  ;;  %v1577_v0 = vld [vmem:[%s315_s28] sm:$0xff]  ;;  %v1579_v1 = vld [vmem:[%s315_s28 + $0x8] sm:$0xff]  ;;  %s1422_s18 = smov 91   ;;  %s1423_s29 = smov 90   ;;  %vm475_vm0 = vcmask 736256  }
  0x2a   : > { %v1086_v2 = vpack.i.bf16 %v1579_v1, %v1577_v0  ;;  %v1585_v3 = vld [vmem:[%s315_s28 + $0x10] sm:$0xff]  ;;  %v357_v4 = vld [vmem:[%s315_s28 + $0x18] sm:$0xff]  ;;  %s1424_s14 = smov 92   ;;  %s1425_s20 = smov 108   ;;  %vm460_vm1 = vcmask 744448   ;;  %vm445_vm2 = vcmask 752640  }
  0x2b   : > { %v1091_v5 = vpack.i.bf16 %v357_v4, %v1585_v3  ;;  %s1426_s16 = smov 109   ;;  %s1427_s17 = smov 110   ;;  %v556_v36 = vld [vmem:[%s1839_s4] sm:$0xff]  ;;  %vm430_vm3 = vcmask 883712   ;;  %vm415_vm4 = vcmask 891904   ;;  %v1430_v44 = vmov 0  }
  0x2c   : > { %1087 = vrot.lane.b32.xlu1 %v1086_v2, %s1422_s18  ;;  %1077 = vrot.lane.b32.xlu0 %v1086_v2, %s1423_s29  ;;  %s1428_s24 = smov 126   ;;  %s1429_s25 = smov 127   ;;  %v565_v37 = vld [vmem:[%s1840_s5] sm:$0xff]  ;;  %vm400_vm5 = vcmask 900096   ;;  %vm385_vm6 = vcmask 1031168   ;;  %vm370_vm7 = vcmask 1039360  }
  0x2d   : > { %1097 = vrot.lane.b32.xlu2 %v1086_v2, %s1424_s14  ;;  %1156 = vset.pattern.permute.xlu1 %v1430_v44  ;;  %vm483_vm8 = vcmask 588800   ;;  %s1432_s27 = smov 19   ;;  %vm767_vm9 = vcmask 154624   ;;  %s1017_s11 = smul.u32 24, %s1569_s23 }
  0x2e   : > { %1157 = vset.pattern.permute.xlu2 %v1430_v44  ;;  %1323 = vset.pattern.permute.xlu0 %v1430_v44  ;;  %s1018_s28 = smul.u32 24, %s1504_s13 }
  0x2f   : > { %s350_s15 = scalar_lea.vmem [#allocation6], %s1017_s11 }
  0x34   : > { %1092 = vrot.lane.b32.xlu1 %v1091_v5, %s1422_s18  ;;  %1082 = vrot.lane.b32.xlu0 %v1091_v5, %s1423_s29 }
  0x35   : > { %1102 = vrot.lane.b32.xlu2 %v1091_v5, %s1424_s14 }
  0x3c   : > { %1112 = vrot.lane.b32.xlu1 %v1091_v5, %s1425_s20  ;;  %1107 = vrot.lane.b32.xlu0 %v1086_v2, %s1425_s20 }
  0x3d   : > { %1117 = vrot.lane.b32.xlu2 %v1086_v2, %s1426_s16 }
  0x44   : > { %1127 = vrot.lane.b32.xlu1 %v1086_v2, %s1427_s17  ;;  %1122 = vrot.lane.b32.xlu0 %v1091_v5, %s1426_s16 }
  0x45   : > { %1132 = vrot.lane.b32.xlu2 %v1091_v5, %s1427_s17 }
  0x4c   : > { %1142 = vrot.lane.b32.xlu1 %v1091_v5, %s1428_s24  ;;  %1137 = vrot.lane.b32.xlu0 %v1086_v2, %s1428_s24 }
  0x4d   : > { %1147 = vrot.lane.b32.xlu2 %v1086_v2, %s1429_s25 }
  0x54   : > { %1152 = vrot.lane.b32.xlu0 %v1091_v5, %s1429_s25  ;;  %559 = vperm.xlu1 %1156, %v556_v36  }
  0x55   : > { %568 = vperm.xlu2 %1157, %v565_v37  }
  0x87   : > { %v1098_v6 = vpop.permute.xlu2 %1097 }
  0x88   : > { %v1100_v7 = vunpack.i.h.bf16 %v1098_v6  ;;  %v1099_v8 = vunpack.i.l.bf16 %v1098_v6 }
  0x8a   : > { %v446_v18 = vsel %vm445_vm2, %v1099_v8, %v1100_v7 }
  0x8f   : > { %v1103_v15 = vpop.permute.xlu2 %1102 }
  0x90   : > { %v1105_v19 = vunpack.i.h.bf16 %v1103_v15  ;;  %v1104_v27 = vunpack.i.l.bf16 %v1103_v15  ;;  %v482_v15 = vld [vmem:[%s1837_s2] sm:$0xff] }
  0x92   : > { %v448_v32 = vsel %vm445_vm2, %v1104_v27, %v1105_v19  ;;  %v447_v33 = vsel %vm445_vm2, %v1100_v7, %v1104_v27 }
  0x97   : > { %v1118_v26 = vpop.permute.xlu2 %1117 }
  0x98   : > { %v1120_v34 = vunpack.i.h.bf16 %v1118_v26  ;;  %v1119_v35 = vunpack.i.l.bf16 %v1118_v26 }
  0x9a   : > { %v416_v48 = vsel %vm415_vm4, %v1119_v35, %v1120_v34 }
  0x9e   : > { %v1088_v9 = vpop.permute.xlu1 %1087  ;;  %v1078_v10 = vpop.permute.xlu0 %1077 }
  0x9f   : > { %v1090_v11 = vunpack.i.h.bf16 %v1088_v9  ;;  %v1089_v12 = vunpack.i.l.bf16 %v1088_v9  ;;  %v1080_v13 = vunpack.i.h.bf16 %v1078_v10  ;;  %v1079_v14 = vunpack.i.l.bf16 %v1078_v10  ;;  %v1133_v49 = vpop.permute.xlu2 %1132 }
  0xa0   : > { %v1135_v50 = vunpack.i.h.bf16 %v1133_v49  ;;  %v1134_v51 = vunpack.i.l.bf16 %v1133_v49 }
  0xa1   : > { %v476_v16 = vsel %vm475_vm0, %v1079_v14, %v1080_v13  ;;  %v461_v17 = vsel %vm460_vm1, %v1089_v12, %v1090_v11 }
  0xa2   : > { %494 = vmatpush.msra.mxu0 %v476_v16  ;;  %v403_v58 = vsel %vm400_vm5, %v1134_v51, %v1135_v50 }
  0xa4   : > { %495 = vmatpush.msra.mxu0 %v461_v17 }
  0xa6   : > { %v1093_v20 = vpop.permute.xlu1 %1092  ;;  %v1083_v21 = vpop.permute.xlu0 %1082  ;;  %496 = vmatpush.msra.mxu0 %v446_v18 }
  0xa7   : > { %v1095_v22 = vunpack.i.h.bf16 %v1093_v20  ;;  %v1094_v23 = vunpack.i.l.bf16 %v1093_v20  ;;  %v1085_v24 = vunpack.i.h.bf16 %v1083_v21  ;;  %v1084_v25 = vunpack.i.l.bf16 %v1083_v21  ;;  %v1148_v63 = vpop.permute.xlu2 %1147 }
  0xa8   : > { %v1150_v2 = vunpack.i.h.bf16 %v1148_v63  ;;  %v1149_v4 = vunpack.i.l.bf16 %v1148_v63 }
  0xa9   : > { %v477_v28 = vsel %vm475_vm0, %v1080_v13, %v1084_v25  ;;  %v478_v29 = vsel %vm475_vm0, %v1084_v25, %v1085_v24  ;;  %v463_v30 = vsel %vm460_vm1, %v1094_v23, %v1095_v22  ;;  %v462_v31 = vsel %vm460_vm1, %v1090_v11, %v1094_v23  ;;  %v577_v25 = vld [vmem:[%s1836_s1] sm:$0x7] }
  0xaa   : > { %514 = vmatpush.msra.mxu1 %v477_v28  ;;  %534 = vmatpush.msra.mxu2 %v478_v29  ;;  %v371_v14 = vsel %vm370_vm7, %v1149_v4, %v1150_v2  ;;  %v580_v28 = vperm.slane %v577_v25, 1  ;;  %v581_v35 = vperm.slane %v577_v25, 2 }
  0xac   : > { %515 = vmatpush.msra.mxu1 %v462_v31  ;;  %535 = vmatpush.msra.mxu2 %v463_v30 }
  0xae   : > { %v1113_v38 = vpop.permute.xlu1 %1112  ;;  %v1108_v39 = vpop.permute.xlu0 %1107  ;;  %516 = vmatpush.msra.mxu1 %v447_v33  ;;  %536 = vmatpush.msra.mxu2 %v448_v32 }
  0xaf   : > { %v1115_v40 = vunpack.i.h.bf16 %v1113_v38  ;;  %v1114_v41 = vunpack.i.l.bf16 %v1113_v38  ;;  %v1110_v42 = vunpack.i.h.bf16 %v1108_v39  ;;  %v1109_v43 = vunpack.i.l.bf16 %v1108_v39  ;;  %v569_v22 = vpop.permute.xlu2 %568 }
  0xb1   : > { %v431_v45 = vsel %vm430_vm3, %v1109_v43, %v1110_v42  ;;  %v432_v46 = vsel %vm430_vm3, %v1110_v42, %v1114_v41  ;;  %v433_v47 = vsel %vm430_vm3, %v1114_v41, %v1115_v40  ;;  %v1431_v41 = vmov 0.0  }
  0xb2   : > { %497 = vmatpush.msra.mxu0 %v431_v45  ;;  %517 = vmatpush.msra.mxu1 %v432_v46 }
  0xb3   : > { %537 = vmatpush.msra.mxu2 %v433_v47 }
  0xb4   : > { %498 = vmatpush.msra.mxu0 %v416_v48 }
  0xb6   : > { %v1128_v52 = vpop.permute.xlu1 %1127  ;;  %v1123_v53 = vpop.permute.xlu0 %1122 }
  0xb7   : > { %v1130_v54 = vunpack.i.h.bf16 %v1128_v52  ;;  %v1129_v55 = vunpack.i.l.bf16 %v1128_v52  ;;  %v1125_v56 = vunpack.i.h.bf16 %v1123_v53  ;;  %v1124_v57 = vunpack.i.l.bf16 %v1123_v53 }
  0xb9   : > { %v417_v59 = vsel %vm415_vm4, %v1120_v34, %v1124_v57  ;;  %v418_v60 = vsel %vm415_vm4, %v1124_v57, %v1125_v56  ;;  %v401_v61 = vsel %vm400_vm5, %v1129_v55, %v1130_v54  ;;  %v402_v62 = vsel %vm400_vm5, %v1130_v54, %v1134_v51 }
  0xba   : > { %518 = vmatpush.msra.mxu1 %v417_v59  ;;  %538 = vmatpush.msra.mxu2 %v418_v60 }
  0xbb   : > { %499 = vmatpush.msra.mxu0 %v401_v61 }
  0xbc   : > { %519 = vmatpush.msra.mxu1 %v402_v62  ;;  %539 = vmatpush.msra.mxu2 %v403_v58 }
  0xbe   : > { %v1143_v5 = vpop.permute.xlu1 %1142  ;;  %v1138_v6 = vpop.permute.xlu0 %1137 }
  0xbf   : > { %v1145_v7 = vunpack.i.h.bf16 %v1143_v5  ;;  %v1144_v8 = vunpack.i.l.bf16 %v1143_v5  ;;  %v1140_v9 = vunpack.i.h.bf16 %v1138_v6  ;;  %v1139_v10 = vunpack.i.l.bf16 %v1138_v6 }
  0xc1   : > { %v386_v11 = vsel %vm385_vm6, %v1139_v10, %v1140_v9  ;;  %v387_v12 = vsel %vm385_vm6, %v1140_v9, %v1144_v8  ;;  %v388_v13 = vsel %vm385_vm6, %v1144_v8, %v1145_v7 }
  0xc2   : > { %500 = vmatpush.msra.mxu0 %v386_v11  ;;  %520 = vmatpush.msra.mxu1 %v387_v12 }
  0xc3   : > { %540 = vmatpush.msra.mxu2 %v388_v13 }
  0xc4   : > { %501 = vmatpush.msra.mxu0 %v371_v14 }
  0xc6   : > { %v1153_v16 = vpop.permute.xlu0 %1152  ;;  %502 = vmatpush.msra.mxu0 %v1577_v0  ;;  %v560_v21 = vpop.permute.xlu1 %559 }
  0xc7   : > { %v1155_v17 = vunpack.i.h.bf16 %v1153_v16  ;;  %v1154_v18 = vunpack.i.l.bf16 %v1153_v16  ;;  %1007 = vmatmul.msk.f32.vlgmr.msra.gmra.mxu0 %vm483_vm8, %v482_v15 }
  0xc9   : > { %v372_v19 = vsel %vm370_vm7, %v1150_v2, %v1154_v18  ;;  %v373_v20 = vsel %vm370_vm7, %v1154_v18, %v1155_v17 }
  0xca   : > { %521 = vmatpush.msra.mxu1 %v372_v19  ;;  %541 = vmatpush.msra.mxu2 %v373_v20 }
  0xcc   : > { %522 = vmatpush.msra.mxu1 %v1579_v1  ;;  %542 = vmatpush.msra.mxu2 %v1585_v3  ;;  %v579_v3 = vperm.slane %v577_v25, 0 }
  0xcd   : > { %1008 = vmatmul.msk.f32.vlgmr.msra.gmra.mxu1 %vm483_vm8, %v482_v15  ;;  %1009 = vmatmul.msk.f32.vlgmr.msra.gmra.mxu2 %vm483_vm8, %v482_v15 }
 0x144   : > { %v1641_v0 = vpop.f32.mrf.mxu0 }
 0x145   : > { %v562_v23 = vmul.f32 %v560_v21, %v1641_v0 }
 0x147   : > { %v571_v24 = vadd.f32 %v569_v22, %v562_v23 }
 0x149   : > { %v574_v27 = vmax.f32 %v571_v24, 0.0 }
 0x14a   : > { %v1647_v26 = vpop.f32.mrf.mxu1 }
 0x14b   : > { %v563_v1 = vmul.f32 %v560_v21, %v1647_v26  ;;  %v585_v31 = vmul.f32 %v579_v3, %v574_v27 }
 0x14d   : > { %v572_v29 = vadd.f32 %v569_v22, %v563_v1  ;;  %v1183_v42 = vpack.i.bf16 %v585_v31, %v1431_v41 }
 0x14f   : > { %v575_v30 = vmax.f32 %v572_v29, 0.0 }
 0x150   : > { %v1650_v32 = vpop.f32.mrf.mxu2 }
 0x151   : > { %v586_v33 = vmul.f32 %v580_v28, %v575_v30  ;;  %v564_v34 = vmul.f32 %v560_v21, %v1650_v32 }
 0x153   : > { %v573_v36 = vadd.f32 %v569_v22, %v564_v34  ;;  %v1168_v37 = vpack.i.bf16 %v586_v33, %v585_v31 }
 0x155   : > { %v576_v38 = vmax.f32 %v573_v36, 0.0  ;;  %1169 = vrot.lane.b32.xlu2 %v1168_v37, %s1424_s14  ;;  %1164 = vrot.lane.b32.xlu1 %v1168_v37, %s1422_s18 }
 0x156   : > { %1159 = vrot.lane.b32.xlu0 %v1168_v37, %s1423_s29 }
 0x157   : > { %v587_v39 = vmul.f32 %v581_v35, %v576_v38 }
 0x159   : > { %v1656_v40 = vpack.i.bf16 %v587_v39, %v586_v33  ;;  %v1203_v43 = vpack.i.bf16 0.0, %v587_v39 }
 0x15d   : > { %1179 = vrot.lane.b32.xlu2 %v1168_v37, %s1426_s16  ;;  %1184 = vrot.lane.b32.xlu1 %v1183_v42, %s1427_s17 }
 0x15e   : > { %1174 = vrot.lane.b32.xlu0 %v1168_v37, %s1425_s20 }
 0x165   : > { %1209 = vrot.lane.b32.xlu2 %v1656_v40, %s1427_s17  ;;  %1189 = vrot.lane.b32.xlu1 %v1183_v42, %s1428_s24 }
 0x166   : > { %1204 = vrot.lane.b32.xlu0 %v1203_v43, %s1422_s18  ;;  %s926_s18 = sshll.u32 %s350_s15, 4  ;;  %s927_s18 = int_to_ptr.vmem [resolvable:$true] %s926_s18 }
 0x16d   : > { %1219 = vrot.lane.b32.xlu2 %v1656_v40, %s1428_s24  ;;  %1194 = vrot.lane.b32.xlu1 %v1203_v43, %s1423_s29  ;;  %s913_s29 = scalar_lea.sflag [#allocation5], %s1569_s23  ;;  %s1374_s24 = scalar_lea.hbm %s1844_s9, 48 }
 0x16e   : > { %1214 = vrot.lane.b32.xlu0 %v1203_v43, %s1424_s14 }
 0x175   : > { %1229 = vrot.lane.b32.xlu2 %v1656_v40, %s1429_s25  ;;  %1199 = vrot.lane.b32.xlu1 %v1183_v42, %s1429_s25 }
 0x176   : > { %1224 = vrot.lane.b32.xlu0 %v1203_v43, %s1425_s20 }
 0x17d   : > { %1234 = vrot.lane.b32.xlu2 %v1183_v42, %s1432_s27 }
 0x17e   : > { %642 = vrot.lane.b32.xlu0 %v587_v39, %s1426_s16 }
 0x1af   : > { %v1675_v44 = vpop.permute.xlu2 %1169 }
 0x1b0   : > { %v1172_v45 = vunpack.i.h.bf16 %v1675_v44  ;;  %v1171_v46 = vunpack.i.l.bf16 %v1675_v44 }
 0x1b2   : > { %v669_v47 = vsel %vm445_vm2, %v1171_v46, %v1172_v45 }
 0x1b3   : > { %v1248_v48 = vpack.i.bf16 %v669_v47, %v1171_v46 }
 0x1b5   : > { %1249 = vrot.lane.b32.xlu0 %v1248_v48, %s1432_s27 }
 0x1b7   : > { %v1683_v49 = vpop.permute.xlu2 %1179 }
 0x1b8   : > { %v1182_v50 = vunpack.i.h.bf16 %v1683_v49  ;;  %v1181_v51 = vunpack.i.l.bf16 %v1683_v49 }
 0x1ba   : > { %v644_v52 = vsel %vm415_vm4, %v1181_v51, %v1182_v50 }
 0x1bb   : > { %v1258_v53 = vpack.i.bf16 %v644_v52, %v1181_v51 }
 0x1bd   : > { %1259 = vrot.lane.b32.xlu0 %v1258_v53, %s1432_s27 }
 0x1bf   : > { %v1692_v61 = vpop.permute.xlu2 %1209 }
 0x1c0   : > { %v1211_v5 = vunpack.i.l.bf16 %v1692_v61 }
 0x1c7   : > { %v1165_v54 = vpop.permute.xlu1 %1164  ;;  %v1220_v16 = vpop.permute.xlu2 %1219 }
 0x1c8   : > { %v1167_v55 = vunpack.i.h.bf16 %v1165_v54  ;;  %v1166_v56 = vunpack.i.l.bf16 %v1165_v54  ;;  %v1160_v57 = vpop.permute.xlu0 %1159  ;;  %v1221_v18 = vunpack.i.l.bf16 %v1220_v16 }
 0x1c9   : > { %v1162_v58 = vunpack.i.h.bf16 %v1160_v57  ;;  %v1161_v59 = vunpack.i.l.bf16 %v1160_v57 }
 0x1ca   : > { %v680_v60 = vsel %vm460_vm1, %v1166_v56, %v1167_v55 }
 0x1cb   : > { %v1243_v62 = vpack.i.bf16 %v680_v60, %v1166_v56  ;;  %v691_v63 = vsel %vm475_vm0, %v1161_v59, %v1162_v58 }
 0x1cc   : > { %v1238_v2 = vpack.i.bf16 %v691_v63, %v1161_v59 }
 0x1cd   : > { %1244 = vrot.lane.b32.xlu2 %v1243_v62, %s1432_s27 }
 0x1ce   : > { %1239 = vrot.lane.b32.xlu1 %v1238_v2, %s1432_s27 }
 0x1cf   : > { %v1185_v4 = vpop.permute.xlu1 %1184  ;;  %v1230_v37 = vpop.permute.xlu2 %1229 }
 0x1d0   : > { %v1187_v6 = vunpack.i.h.bf16 %v1185_v4  ;;  %v1186_v7 = vunpack.i.l.bf16 %v1185_v4  ;;  %v1175_v8 = vpop.permute.xlu0 %1174  ;;  %v1231_v39 = vunpack.i.l.bf16 %v1230_v37 }
 0x1d1   : > { %v1177_v9 = vunpack.i.h.bf16 %v1175_v8  ;;  %v1176_v10 = vunpack.i.l.bf16 %v1175_v8  ;;  %v1212_v8 = vunpack.i.h.bf16 %v1692_v61 }
 0x1d2   : > { %v635_v11 = vsel %vm400_vm5, %v1186_v7, %v1187_v6  ;;  %v636_v12 = vsel %vm400_vm5, %v1187_v6, %v1211_v5  ;;  %v1222_v6 = vunpack.i.h.bf16 %v1220_v16 }
 0x1d3   : > { %v658_v13 = vsel %vm430_vm3, %v1176_v10, %v1177_v9  ;;  %v1263_v14 = vpack.i.bf16 %v636_v12, %v635_v11  ;;  %v885_v11 = vld [vmem:[%s1842_s7] sm:$0xff] }
 0x1d4   : > { %v1253_v15 = vpack.i.bf16 %v658_v13, %v1176_v10  ;;  %v626_v44 = vsel %vm385_vm6, %v1221_v18, %v1222_v6  ;;  %v547_v10 = vld [vmem:[%s1838_s3] sm:$0xff] }
 0x1d5   : > { %1264 = vrot.lane.b32.xlu2 %v1263_v14, %s1432_s27  ;;  %v1308_v49 = vpack.i.bf16 %v1222_v6, %v626_v44 }
 0x1d6   : > { %1254 = vrot.lane.b32.xlu1 %v1253_v15, %s1432_s27 }
 0x1d7   : > { %v1190_v17 = vpop.permute.xlu1 %1189  ;;  %v1746_v61 = vpop.permute.xlu2 %1234 }
 0x1d8   : > { %v1192_v19 = vunpack.i.h.bf16 %v1190_v17  ;;  %v1191_v20 = vunpack.i.l.bf16 %v1190_v17  ;;  %v1205_v21 = vpop.permute.xlu0 %1204 }
 0x1d9   : > { %v1207_v25 = vunpack.i.h.bf16 %v1205_v21  ;;  %v1206_v1 = vunpack.i.l.bf16 %v1205_v21 }
 0x1da   : > { %v624_v22 = vsel %vm385_vm6, %v1191_v20, %v1192_v19  ;;  %v625_v23 = vsel %vm385_vm6, %v1192_v19, %v1221_v18 }
 0x1db   : > { %v1268_v24 = vpack.i.bf16 %v625_v23, %v624_v22  ;;  %v681_v30 = vsel %vm460_vm1, %v1167_v55, %v1206_v1  ;;  %v682_v31 = vsel %vm460_vm1, %v1206_v1, %v1207_v25 }
 0x1dc   : > { %v1283_v36 = vpack.i.bf16 %v682_v31, %v681_v30 }
 0x1de   : > { %1269 = vrot.lane.b32.xlu1 %v1268_v24, %s1432_s27 }
 0x1df   : > { %v1195_v3 = vpop.permute.xlu1 %1194 }
 0x1e0   : > { %v1197_v27 = vunpack.i.h.bf16 %v1195_v3  ;;  %v1196_v28 = vunpack.i.l.bf16 %v1195_v3  ;;  %v1215_v29 = vpop.permute.xlu0 %1214 }
 0x1e1   : > { %v1217_v55 = vunpack.i.h.bf16 %v1215_v29  ;;  %v1216_v56 = vunpack.i.l.bf16 %v1215_v29 }
 0x1e2   : > { %v692_v33 = vsel %vm475_vm0, %v1162_v58, %v1196_v28  ;;  %v693_v34 = vsel %vm475_vm0, %v1196_v28, %v1197_v27  ;;  %v1232_v58 = vunpack.i.h.bf16 %v1230_v37 }
 0x1e3   : > { %v1278_v35 = vpack.i.bf16 %v693_v34, %v692_v33  ;;  %v670_v60 = vsel %vm445_vm2, %v1172_v45, %v1216_v56  ;;  %v671_v62 = vsel %vm445_vm2, %v1216_v56, %v1217_v55  ;;  %v637_v45 = vsel %vm400_vm5, %v1211_v5, %v1212_v8 }
 0x1e4   : > { %v615_v63 = vsel %vm370_vm7, %v1231_v39, %v1232_v58  ;;  %v1288_v7 = vpack.i.bf16 %v671_v62, %v670_v60  ;;  %v1237_v55 = vunpack.i.h.bf16 %v1746_v61  ;;  %v1236_v56 = vunpack.i.l.bf16 %v1746_v61  ;;  %v694_v60 = vld [vmem:[%s1841_s6] sm:$0xff] }
 0x1e5   : > { %1279 = vrot.lane.b32.xlu2 %v1278_v35, %s1432_s27 }
 0x1e6   : > { %1284 = vrot.lane.b32.xlu1 %v1283_v36, %s1432_s27  ;;  %v768_v62 = vsel %vm767_vm9, %v1236_v56, %v1237_v55 }
 0x1e7   : > { %v1200_v38 = vpop.permute.xlu1 %1199 }
 0x1e8   : > { %v1202_v41 = vunpack.i.h.bf16 %v1200_v38  ;;  %v1201_v42 = vunpack.i.l.bf16 %v1200_v38  ;;  %v1225_v43 = vpop.permute.xlu0 %1224 }
 0x1e9   : > { %v1227_v46 = vunpack.i.h.bf16 %v1225_v43  ;;  %v1226_v47 = vunpack.i.l.bf16 %v1225_v43 }
 0x1ea   : > { %v613_v48 = vsel %vm370_vm7, %v1201_v42, %v1202_v41  ;;  %v614_v51 = vsel %vm370_vm7, %v1202_v41, %v1231_v39 }
 0x1eb   : > { %v1273_v52 = vpack.i.bf16 %v614_v51, %v613_v48  ;;  %v659_v53 = vsel %vm430_vm3, %v1177_v9, %v1226_v47  ;;  %v660_v54 = vsel %vm430_vm3, %v1226_v47, %v1227_v46  ;;  %v1313_v9 = vpack.i.bf16 %v1232_v58, %v615_v63  ;;  %v894_v47 = vld [vmem:[%s1843_s8] sm:$0xff] }
 0x1ec   : > { %v1293_v57 = vpack.i.bf16 %v660_v54, %v659_v53 }
 0x1ed   : > { %1274 = vrot.lane.b32.xlu0 %v1273_v52, %s1432_s27 }
 0x1ee   : > { %1294 = vrot.lane.b32.xlu2 %v1293_v57, %s1432_s27 }
 0x1f0   : > { %v643_v59 = vpop.permute.xlu0 %642 }
 0x1f1   : > { %v645_v2 = vsel %vm415_vm4, %v1182_v50, %v643_v59  ;;  %v1303_v50 = vpack.i.bf16 %v1212_v8, %v637_v45 }
 0x1f2   : > { %v1298_v4 = vpack.i.bf16 %v643_v59, %v645_v2 }
 0x1f4   : > { %1299 = vrot.lane.b32.xlu1 %v1298_v4, %s1432_s27 }
 0x1f5   : > { %1289 = vrot.lane.b32.xlu0 %v1288_v7, %s1432_s27 }
 0x1f6   : > { %1314 = vrot.lane.b32.xlu2 %v1313_v9, %s1432_s27 }
 0x1fc   : > { %1309 = vrot.lane.b32.xlu1 %v1308_v49, %s1432_s27 }
 0x1fd   : > { %1304 = vrot.lane.b32.xlu0 %v1303_v50, %s1432_s27 }
 0x1fe   : > { %550 = vperm.xlu2 %1157, %v547_v10  }
 0x204   : > { %888 = vperm.xlu1 %1156, %v885_v11  }
 0x205   : > { %1319 = vrot.lane.b32.xlu0 %v1656_v40, %s1432_s27  ;;  %s924_s27 = scalar_lea.hbm %s1844_s9, %s1018_s28 }
 0x206   : > { %s928_s13 = sshll.u32 %s924_s27, 4  ;;  %s929_s13 = int_to_ptr.hbm [resolvable:$true] %s928_s13 }
 0x207   : > { %s1368_s14 = sshra.s32 %s929_s13, 4  ;;  %s1369_s14 = int_to_ptr.hbm [resolvable:$true] %s1368_s14 }
 0x208   : > { %s1370_s20 = scalar_lea.hbm %s1369_s14, 24  ;;  %p1375_p0 = scmp.lt.s32.totalorder %s1369_s14, %s1844_s9 }
 0x209   : > { %p1371_p6 = scmp.ne.s32.totalorder %s1369_s14, %s1370_s20  ;;  %p1376_p1 = scmp.lt.s32.totalorder %s1374_s24, %s1370_s20 }
 0x20b   : > { %p1372_p9 = pnand %p1371_p6, %p1533_p11  ;;  %p1377_p3 = por %p1376_p1, %p1375_p0 }
 0x20d   : > { %897 = vperm.xlu0 %1323, %v894_v47   ;;  %p1373_p13 = pneg %p1372_p9 }
 0x20f   : > { %p1378_p4 = pnand %p1377_p3, %p1373_p13 }
 0x227   : > { %v1245_v5 = vpop.permute.xlu2 %1244  ;;  %v1750_v13 = vpop.permute.xlu0 %1249 }
 0x228   : > { %v1247_v18 = vunpack.i.h.bf16 %v1245_v5  ;;  %v1246_v19 = vunpack.i.l.bf16 %v1245_v5  ;;  %v1252_v40 = vunpack.i.h.bf16 %v1750_v13  ;;  %v1251_v23 = vunpack.i.l.bf16 %v1750_v13 }
 0x22a   : > { %v789_v1 = vsel %vm767_vm9, %v1246_v19, %v1247_v18  ;;  %v786_v27 = vsel %vm767_vm9, %v1251_v23, %v1252_v40 }
 0x22f   : > { %v1748_v12 = vpop.permute.xlu2 %1264  ;;  %v1260_v3 = vpop.permute.xlu0 %1259 }
 0x230   : > { %v1262_v29 = vunpack.i.h.bf16 %v1260_v3  ;;  %v1261_v30 = vunpack.i.l.bf16 %v1260_v3  ;;  %v1267_v34 = vunpack.i.h.bf16 %v1748_v12  ;;  %v1266_v35 = vunpack.i.l.bf16 %v1748_v12 }
 0x232   : > { %v780_v37 = vsel %vm767_vm9, %v1261_v30, %v1262_v29  ;;  %v777_v38 = vsel %vm767_vm9, %v1266_v35, %v1267_v34 }
 0x23f   : > { %v1280_v14 = vpop.permute.xlu2 %1279 }
 0x240   : > { %v1282_v15 = vunpack.i.h.bf16 %v1280_v14  ;;  %v1281_v16 = vunpack.i.l.bf16 %v1280_v14  ;;  %v1240_v17 = vpop.permute.xlu1 %1239 }
 0x241   : > { %v1242_v20 = vunpack.i.h.bf16 %v1240_v17  ;;  %v1241_v21 = vunpack.i.l.bf16 %v1240_v17 }
 0x242   : > { %v794_v22 = vsel %vm767_vm9, %v1281_v16, %v1282_v15 }
 0x243   : > { %v792_v24 = vsel %vm767_vm9, %v1241_v21, %v1242_v20  ;;  %v793_v25 = vsel %vm767_vm9, %v1242_v20, %v1281_v16  ;;  %872 = vmatpush.msrb.mxu1 %v794_v22 }
 0x244   : > { %832 = vmatpush.msra.mxu3 %v792_v24  ;;  %852 = vmatpush.msrb.mxu0 %v793_v25 }
 0x246   : > { %833 = vmatpush.msra.mxu3 %v789_v1 }
 0x248   : > { %v1255_v28 = vpop.permute.xlu1 %1254  ;;  %834 = vmatpush.msra.mxu3 %v786_v27  ;;  %v1295_v63 = vpop.permute.xlu2 %1294 }
 0x249   : > { %v1257_v31 = vunpack.i.h.bf16 %v1255_v28  ;;  %v1256_v33 = vunpack.i.l.bf16 %v1255_v28  ;;  %v1297_v6 = vunpack.i.h.bf16 %v1295_v63  ;;  %v1296_v7 = vunpack.i.l.bf16 %v1295_v63 }
 0x24b   : > { %v783_v36 = vsel %vm767_vm9, %v1256_v33, %v1257_v31  ;;  %v784_v10 = vsel %vm767_vm9, %v1257_v31, %v1296_v7  ;;  %v785_v11 = vsel %vm767_vm9, %v1296_v7, %v1297_v6 }
 0x24c   : > { %835 = vmatpush.msra.mxu3 %v783_v36 }
 0x24e   : > { %836 = vmatpush.msra.mxu3 %v780_v37 }
 0x250   : > { %v1270_v39 = vpop.permute.xlu1 %1269  ;;  %837 = vmatpush.msra.mxu3 %v777_v38  ;;  %v1315_v14 = vpop.permute.xlu2 %1314 }
 0x251   : > { %v1272_v41 = vunpack.i.h.bf16 %v1270_v39  ;;  %v1271_v42 = vunpack.i.l.bf16 %v1270_v39  ;;  %v1317_v20 = vunpack.i.h.bf16 %v1315_v14  ;;  %v1316_v21 = vunpack.i.l.bf16 %v1315_v14 }
 0x253   : > { %v774_v43 = vsel %vm767_vm9, %v1271_v42, %v1272_v41  ;;  %v773_v1 = vsel %vm767_vm9, %v1316_v21, %v1317_v20 }
 0x254   : > { %838 = vmatpush.msra.mxu3 %v774_v43 }
 0x258   : > { %v1285_v46 = vpop.permute.xlu1 %1284  ;;  %v551_v30 = vpop.permute.xlu2 %550 }
 0x259   : > { %v1287_v48 = vunpack.i.h.bf16 %v1285_v46  ;;  %v1286_v51 = vunpack.i.l.bf16 %v1285_v46  ;;  %v553_v36 = vadd.f32 %v551_v30, %v1641_v0  ;;  %v554_v47 = vadd.f32 %v551_v30, %v1647_v26 }
 0x25b   : > { %v790_v52 = vsel %vm767_vm9, %v1247_v18, %v1286_v51  ;;  %v791_v53 = vsel %vm767_vm9, %v1286_v51, %v1287_v48  ;;  %v555_v48 = vadd.f32 %v551_v30, %v1650_v32 }
 0x25c   : > { %853 = vmatpush.msrb.mxu0 %v790_v52  ;;  %873 = vmatpush.msrb.mxu1 %v791_v53 }
 0x25f   : > { %v1275_v54 = vpop.permute.xlu0 %1274 }
 0x260   : > { %v1277_v57 = vunpack.i.h.bf16 %v1275_v54  ;;  %v1276_v58 = vunpack.i.l.bf16 %v1275_v54 }
 0x262   : > { %v771_v59 = vsel %vm767_vm9, %v1276_v58, %v1277_v57  ;;  %v772_v25 = vsel %vm767_vm9, %v1277_v57, %v1316_v21 }
 0x263   : > { %839 = vmatpush.msra.mxu3 %v771_v59 }
 0x265   : > { %840 = vmatpush.msra.mxu3 %v768_v62 }
 0x266   : > { %v1300_v2 = vpop.permute.xlu1 %1299  ;;  %1010 = vmatmul.msk.f32.vlgmr.msra.gmra.mxu3 %vm483_vm8, %v694_v60 }
 0x267   : > { %v1290_v4 = vpop.permute.xlu0 %1289  ;;  %v1302_v44 = vunpack.i.h.bf16 %v1300_v2  ;;  %v1301_v45 = vunpack.i.l.bf16 %v1300_v2 }
 0x268   : > { %v1292_v8 = vunpack.i.h.bf16 %v1290_v4  ;;  %v1291_v9 = vunpack.i.l.bf16 %v1290_v4 }
 0x269   : > { %v781_v5 = vsel %vm767_vm9, %v1262_v29, %v1301_v45  ;;  %v782_v13 = vsel %vm767_vm9, %v1301_v45, %v1302_v44 }
 0x26a   : > { %v787_v49 = vsel %vm767_vm9, %v1252_v40, %v1291_v9  ;;  %v788_v50 = vsel %vm767_vm9, %v1291_v9, %v1292_v8 }
 0x26b   : > { %854 = vmatpush.msrb.mxu0 %v787_v49  ;;  %874 = vmatpush.msrb.mxu1 %v788_v50 }
 0x26d   : > { %855 = vmatpush.msrb.mxu0 %v784_v10  ;;  %875 = vmatpush.msrb.mxu1 %v785_v11 }
 0x26e   : > { %v1310_v61 = vpop.permute.xlu1 %1309 }
 0x26f   : > { %v1305_v15 = vpop.permute.xlu0 %1304  ;;  %856 = vmatpush.msrb.mxu0 %v781_v5  ;;  %876 = vmatpush.msrb.mxu1 %v782_v13  ;;  %v1312_v16 = vunpack.i.h.bf16 %v1310_v61  ;;  %v1311_v17 = vunpack.i.l.bf16 %v1310_v61 }
 0x270   : > { %v1307_v18 = vunpack.i.h.bf16 %v1305_v15  ;;  %v1306_v19 = vunpack.i.l.bf16 %v1305_v15 }
 0x271   : > { %v775_v23 = vsel %vm767_vm9, %v1272_v41, %v1311_v17  ;;  %v776_v24 = vsel %vm767_vm9, %v1311_v17, %v1312_v16 }
 0x272   : > { %v778_v22 = vsel %vm767_vm9, %v1267_v34, %v1306_v19  ;;  %v779_v40 = vsel %vm767_vm9, %v1306_v19, %v1307_v18 }
 0x273   : > { %857 = vmatpush.msrb.mxu0 %v778_v22  ;;  %877 = vmatpush.msrb.mxu1 %v779_v40 }
 0x275   : > { %858 = vmatpush.msrb.mxu0 %v775_v23  ;;  %878 = vmatpush.msrb.mxu1 %v776_v24 }
 0x276   : > { %v889_v31 = vpop.permute.xlu1 %888 }
 0x277   : > { %v1320_v3 = vpop.permute.xlu0 %1319  ;;  %859 = vmatpush.msrb.mxu0 %v772_v25  ;;  %879 = vmatpush.msrb.mxu1 %v773_v1 }
 0x278   : > { %v1322_v12 = vunpack.i.h.bf16 %v1320_v3  ;;  %v1321_v27 = vunpack.i.l.bf16 %v1320_v3 }
 0x27a   : > { %v769_v28 = vsel %vm767_vm9, %v1237_v55, %v1321_v27  ;;  %v770_v29 = vsel %vm767_vm9, %v1321_v27, %v1322_v12 }
 0x27b   : > { %860 = vmatpush.msrb.mxu0 %v769_v28  ;;  %880 = vmatpush.msrb.mxu1 %v770_v29 }
 0x27c   : > { %1011 = vmatmul.msk.f32.vlgmr.msrb.gmra.mxu0 %vm483_vm8, %v694_v60  ;;  %1012 = vmatmul.msk.f32.vlgmr.msrb.gmra.mxu1 %vm483_vm8, %v694_v60 }
 0x27f   : > { %v898_v34 = vpop.permute.xlu0 %897 }
 0x2e9   : > { %v842_v33 = vpop.f32.mrf.mxu3 }
 0x2ea   : > { %v891_v35 = vmul.f32 %v889_v31, %v842_v33 }
 0x2ec   : > { %v900_v37 = vadd.f32 %v898_v34, %v891_v35 }
 0x2ee   : > { %v903_v38 = vadd.f32 %v900_v37, %v553_v36 }
 0x2f0   : > { %v906_v39 = vmax.f32 %v903_v38, 0.0 }
 0x2f2   : > { %909 = vst [vmem:[%s350_s15] sm:$0xff] %v906_v39 }
 0x2f9   : > { %v862_v41 = vpop.f32.mrf.mxu0  ;;  %v882_v42 = vpop.f32.mrf.mxu1 }
 0x2fa   : > { %v892_v43 = vmul.f32 %v889_v31, %v862_v41  ;;  %v893_v46 = vmul.f32 %v889_v31, %v882_v42 }
 0x2fc   : > { %v901_v0 = vadd.f32 %v898_v34, %v892_v43  ;;  %v902_v51 = vadd.f32 %v898_v34, %v893_v46 }
 0x2fe   : > { %v904_v52 = vadd.f32 %v901_v0, %v554_v47  ;;  %v905_v53 = vadd.f32 %v902_v51, %v555_v48 }
 0x300   : > { %v907_v54 = vmax.f32 %v904_v52, 0.0  ;;  %v908_v55 = vmax.f32 %v905_v53, 0.0 }
 0x302   : > { %910 = vst [vmem:[%s350_s15 + $0x8] sm:$0xff] %v907_v54 }
 0x303   : > { %911 = vst [vmem:[%s350_s15 + $0x10] sm:$0xff] %v908_v55 }
 0x304   : > { %1381 = shalt.err (!%p1378_p4)
}
 0x305   : > { %1021 = dma.vmem_to_hbm [thread:$0]  (%p1533_p11), %s927_s18, 384, %s929_s13, %s913_s29  }
 0x306 PF: > { %s940_s23 = sand.u32 1, %s1408_s30   ;;  %p1856_p7 = scmp.ge.s32.totalorder %s1420_s12, 2 }
 0x307   : > { %s941_s15 = scalar_lea.sflag [#allocation5], %s940_s23 }
 0x308   : > { %p1028_p5 = pnand %p1856_p7, %p1537_p12 }
 0x30a   : > { %p1029_p8 = pneg %p1028_p5 }
 0x30c   : > { %1403 = dma.done.wait (%p1029_p8), %s941_s15, 384  }
 0x30d   : > { %1405 = vsyncadd (%p1029_p8), %s941_s15, 4294966912  ;;  %s1857_s12 = sld [smem:[#allocation10_spill]]  ;;  %s1860_s30 = smov %s1412_s10 }
 0x30e   : > { %s1858_s28 = sld [smem:[#allocation9_spill]] }
 0x30f   : > { %s1859_s11 = sld [smem:[#allocation11_spill]] }
 0x313   : > { %p22_p10 = scmp.ge.s32.totalorder %s1857_s12, 4  }
 0x314   : > { %s1861_s10 = smov %s1858_s28 }
 0x315   :  { %24 = sbr.rel (!%p22_p10) target bundleno = 5 (0x5), region = 101 }
 0x31a   :  { %947 = vsyncpa [#allocation4], 1 }
 0x31b   :  { %949 = vsyncpa [#allocation4 + $0x1], 1 }
 0x31c   :  { %950 = vsyncpa [#allocation5], 1 }
 0x31d   :  { %952 = vsyncpa [#allocation5 + $0x1], 1 }

</bundles_post_ra>
